<compile_context>
chip_gen: v7x
topology: tpu7x:2x2x1
jax: 0.10.0
libtpu: 0.0.40
codegen_flags: <defaults>
</compile_context>

<pallas_src>
import jax
import jax.numpy as jnp
from jax.experimental import pallas as pl
from jax.experimental.pallas import tpu as pltpu

ACTION_SIZE = 2
STATE_SIZE = 8        # stand-in for data.shape[1] from charging_data.csv
HIDDEN = 16
LANES = 128           # lane width; batch tile TB is a multiple of this


def _round_up(n, m):
    return ((n + m - 1) // m) * m


def init_params(key):
    """PyTorch nn.Linear-style init (uniform +/- 1/sqrt(fan_in)), (1,out) biases."""
    def linear(key, fan_in, fan_out):
        kw, kb = jax.random.split(key)
        bound = 1.0 / jnp.sqrt(fan_in)
        w = jax.random.uniform(kw, (fan_in, fan_out), jnp.float32, -bound, bound)
        b = jax.random.uniform(kb, (1, fan_out), jnp.float32, -bound, bound)
        return w, b

    k1, k2, k3 = jax.random.split(key, 3)
    w1, b1 = linear(k1, STATE_SIZE, HIDDEN)
    w2, b2 = linear(k2, HIDDEN, HIDDEN)
    w3, b3 = linear(k3, HIDDEN, ACTION_SIZE)
    return (w1, b1, w2, b2, w3, b3)


def pack_params(params):
    """Pack transposed params into one small zero-padded (R, C) f32 slab.

    Feature-major: each weight is stored transposed (out_features x in_features)
    and biases as columns, so the kernel computes h = relu(W^T @ x + b) with the
    batch on lanes. Sections are padded only to 8 sublanes (not 128 lanes), and
    each starts on an 8-row boundary so static in-kernel slices never straddle
    a sublane tile. Zero padding keeps padded output rows exactly 0 through
    bias/ReLU, so slicing [:ACTION_SIZE] at the end is exact.
    Returns (slab, offsets, s_pad, a_pad).
    """
    w1, b1, w2, b2, w3, b3 = params
    s_pad = _round_up(STATE_SIZE, 8)
    a_pad = _round_up(ACTION_SIZE, 8)
    C = max(s_pad, HIDDEN)                      # slab minor dim (16 here)

    sections = [
        (w1.T, HIDDEN),    # (16, S)  fc1 weight, transposed
        (b1.T, HIDDEN),    # (16, 1)  fc1 bias as a column
        (w2.T, HIDDEN),    # (16, 16) fc2 weight, transposed
        (b2.T, HIDDEN),    # (16, 1)
        (w3.T, a_pad),     # (2, 16) -> padded to 8 rows
        (b3.T, a_pad),     # (2, 1)  -> padded to 8 rows
    ]
    blocks, offsets, row = [], [], 0
    for arr, rows in sections:
        rows_p = _round_up(rows, 8)
        blk = jnp.zeros((rows_p, C), jnp.float32)
        blk = blk.at[: arr.shape[0], : arr.shape[1]].set(arr.astype(jnp.float32))
        blocks.append(blk)
        offsets.append(row)
        row += rows_p
    slab = jnp.concatenate(blocks, axis=0)      # (80, 16) for S=8
    return slab, tuple(offsets), s_pad, a_pad


def _make_kernel(offsets, s_pad, a_pad):
    o_w1, o_b1, o_w2, o_b2, o_w3, o_b3 = offsets

    def kernel(x_ref, p_ref, o_ref):
        x = x_ref[...]                                    # (s_pad, TB), batch on lanes
        w1t = p_ref[o_w1:o_w1 + HIDDEN, :s_pad]           # (16, s_pad)
        b1 = p_ref[o_b1:o_b1 + HIDDEN, 0:1]               # (16, 1), broadcast over lanes
        w2t = p_ref[o_w2:o_w2 + HIDDEN, :HIDDEN]          # (16, 16)
        b2 = p_ref[o_b2:o_b2 + HIDDEN, 0:1]
        w3t = p_ref[o_w3:o_w3 + a_pad, :HIDDEN]           # (8, 16), rows >= ACTION zero
        b3 = p_ref[o_b3:o_b3 + a_pad, 0:1]

        h1 = jnp.dot(w1t, x, preferred_element_type=jnp.float32) + b1
        h1 = jnp.maximum(h1, 0.0)                         # relu(fc1) -> (16, TB)
        h2 = jnp.dot(w2t, h1, preferred_element_type=jnp.float32) + b2
        h2 = jnp.maximum(h2, 0.0)                         # relu(fc2) -> (16, TB)
        out = jnp.dot(w3t, h2, preferred_element_type=jnp.float32) + b3
        o_ref[...] = out                                  # (8, TB) lane-dense store

    return kernel


def _choose_tb(B, block_batch):
    """Batch tile: multiple of 128 lanes, >=2 grid steps for big batches (v7x)."""
    tb = _round_up(max(min(block_batch, B), 1), LANES)
    if B > 2 * LANES:
        tb = min(tb, _round_up(-(-B // 2), LANES))        # guarantee >= 2 grid steps
    return tb


def qnetwork_forward(x, packed, *, block_batch=4096):
    """Forward pass. x: (B, STATE_SIZE) f32. Returns (B, ACTION_SIZE) f32."""
    slab, offsets, s_pad, a_pad = packed
    B, S = x.shape
    R, C = slab.shape

    TB = _choose_tb(B, block_batch)
    Bp = _round_up(B, TB)
    grid = (Bp // TB,)

    # Feature-major input: (s_pad, Bp), padded rows/cols are zero.
    xt = jnp.pad(x.astype(jnp.float32).T, ((0, s_pad - S), (0, Bp - B)))

    cost = pl.CostEstimate(
        flops=2 * Bp * (s_pad * HIDDEN + HIDDEN * HIDDEN + HIDDEN * a_pad),
        transcendentals=0,
        bytes_accessed=xt.size * 4 + slab.size * 4 + Bp * a_pad * 4,
    )

    out = pl.pallas_call(
        _make_kernel(offsets, s_pad, a_pad),
        out_shape=jax.ShapeDtypeStruct((a_pad, Bp), jnp.float32),
        grid=grid,
        in_specs=[
            pl.BlockSpec((s_pad, TB), lambda i: (0, i)),   # batch tile of states
            pl.BlockSpec((R, C), lambda i: (0, 0)),        # tiny packed params, resident
        ],
        out_specs=pl.BlockSpec((a_pad, TB), lambda i: (0, i)),
        compiler_params=pltpu.CompilerParams(
            dimension_semantics=("parallel",)),            # 2x on v7x's 2 TCs (>=2 steps)
        cost_estimate=cost,
    )(xt, slab)

    return out[:ACTION_SIZE, :B].T


def reference_forward(x, params):
    """Pure-JAX reference for correctness checking."""
    w1, b1, w2, b2, w3, b3 = params
    h1 = jnp.maximum(x @ w1 + b1, 0.0)
    h2 = jnp.maximum(h1 @ w2 + b2, 0.0)
    return h2 @ w3 + b3


if __name__ == "__main__":
    key = jax.random.PRNGKey(0)
    k_params, k_x1, k_x2 = jax.random.split(key, 3)

    params = init_params(k_params)
    packed = pack_params(params)

    # Small demo batch (single grid step).
    x = jax.random.normal(k_x1, (8, STATE_SIZE), jnp.float32)
    out = jax.block_until_ready(qnetwork_forward(x, packed))
    ref = reference_forward(x, params)
    assert out.shape == (8, ACTION_SIZE)
    assert jnp.allclose(out, ref, atol=1e-5, rtol=1e-5)

    # Ragged batch exercising the batch grid (3 tiles of 128) + tail padding.
    x2 = jax.random.normal(k_x2, (300, STATE_SIZE), jnp.float32)
    out2 = jax.block_until_ready(qnetwork_forward(x2, packed, block_batch=128))
    ref2 = reference_forward(x2, params)
    assert out2.shape == (300, ACTION_SIZE)
    assert jnp.allclose(out2, ref2, atol=1e-5, rtol=1e-5)

    print("KERNEL_OK")
</pallas_src>

<mosaic_0001>
module attributes {stable_mosaic.version = 11 : i64} {
  func.func @kernel(%arg0: i32, %arg1: memref<8x128xf32, #tpu.memory_space<vmem>>, %arg2: memref<80x16xf32, #tpu.memory_space<vmem>>, %arg3: memref<8x128xf32, #tpu.memory_space<vmem>>) attributes {dimension_semantics = [#tpu.dimension_semantics<parallel>], iteration_bounds = array<i64: 1>, scalar_prefetch = 0 : i64, scratch_operands = 0 : i64, tpu.core_type = #tpu.core_type<tc>, window_params = [{transform_indices = @transform_0, window_bounds = array<i64: 8, 128>}, {pipeline_mode = #tpu.pipeline_mode<synchronous>, transform_indices = @transform_1, window_bounds = array<i64: 80, 16>}, {transform_indices = @transform_2, window_bounds = array<i64: 8, 128>}]} {
    %c0 = arith.constant 0 : index
    %c0_0 = arith.constant 0 : index
    %0 = vector.load %arg1[%c0, %c0_0] : memref<8x128xf32, #tpu.memory_space<vmem>>, vector<8x128xf32>
    %c0_1 = arith.constant 0 : index
    %c0_2 = arith.constant 0 : index
    %1 = vector.load %arg2[%c0_1, %c0_2] : memref<80x16xf32, #tpu.memory_space<vmem>>, vector<16x8xf32>
    %c16 = arith.constant 16 : index
    %c0_3 = arith.constant 0 : index
    %2 = vector.load %arg2[%c16, %c0_3] : memref<80x16xf32, #tpu.memory_space<vmem>>, vector<16x1xf32>
    %c32 = arith.constant 32 : index
    %c0_4 = arith.constant 0 : index
    %3 = vector.load %arg2[%c32, %c0_4] : memref<80x16xf32, #tpu.memory_space<vmem>>, vector<16x16xf32>
    %c48 = arith.constant 48 : index
    %c0_5 = arith.constant 0 : index
    %4 = vector.load %arg2[%c48, %c0_5] : memref<80x16xf32, #tpu.memory_space<vmem>>, vector<16x1xf32>
    %c64 = arith.constant 64 : index
    %c0_6 = arith.constant 0 : index
    %5 = vector.load %arg2[%c64, %c0_6] : memref<80x16xf32, #tpu.memory_space<vmem>>, vector<8x16xf32>
    %c72 = arith.constant 72 : index
    %c0_7 = arith.constant 0 : index
    %6 = vector.load %arg2[%c72, %c0_7] : memref<80x16xf32, #tpu.memory_space<vmem>>, vector<8x1xf32>
    %cst = arith.constant dense<0.000000e+00> : vector<16x128xf32>
    %7 = tpu.matmul %1, %0, %cst {dimension_numbers = #tpu.dot_dimension_numbers<[1], [0], [0], [1], [0, 0, 1, 1], [], []>} : vector<16x8xf32>, vector<8x128xf32>, vector<16x128xf32> -> vector<16x128xf32>
    %8 = vector.broadcast %2 : vector<16x1xf32> to vector<16x128xf32>
    %9 = arith.addf %7, %8 : vector<16x128xf32>
    %cst_8 = arith.constant 0.000000e+00 : f32
    %10 = vector.broadcast %cst_8 : f32 to vector<16x128xf32>
    %11 = arith.maximumf %9, %10 : vector<16x128xf32>
    %cst_9 = arith.constant dense<0.000000e+00> : vector<16x128xf32>
    %12 = tpu.matmul %3, %11, %cst_9 {dimension_numbers = #tpu.dot_dimension_numbers<[1], [0], [0], [1], [0, 0, 1, 1], [], []>} : vector<16x16xf32>, vector<16x128xf32>, vector<16x128xf32> -> vector<16x128xf32>
    %13 = vector.broadcast %4 : vector<16x1xf32> to vector<16x128xf32>
    %14 = arith.addf %12, %13 : vector<16x128xf32>
    %cst_10 = arith.constant 0.000000e+00 : f32
    %15 = vector.broadcast %cst_10 : f32 to vector<16x128xf32>
    %16 = arith.maximumf %14, %15 : vector<16x128xf32>
    %cst_11 = arith.constant dense<0.000000e+00> : vector<8x128xf32>
    %17 = tpu.matmul %5, %16, %cst_11 {dimension_numbers = #tpu.dot_dimension_numbers<[1], [0], [0], [1], [0, 0, 1, 1], [], []>} : vector<8x16xf32>, vector<16x128xf32>, vector<8x128xf32> -> vector<8x128xf32>
    %18 = vector.broadcast %6 : vector<8x1xf32> to vector<8x128xf32>
    %19 = arith.addf %17, %18 : vector<8x128xf32>
    %c0_12 = arith.constant 0 : index
    %c0_13 = arith.constant 0 : index
    %20 = vector.load %arg3[%c0_12, %c0_13] : memref<8x128xf32, #tpu.memory_space<vmem>>, vector<8x128xf32>
    tpu.vector_store %arg3[%c0_12, %c0_13], %19 {strides = array<i32>} : memref<8x128xf32, #tpu.memory_space<vmem>>, vector<8x128xf32>,
    return
  }
  func.func @transform_0(%arg0: i32) -> (i32, i32) {
    %c0_i32 = arith.constant 0 : i32
    %c0_i32_0 = arith.constant 0 : i32
    return %c0_i32, %arg0 : i32, i32
  }
  func.func @transform_1(%arg0: i32) -> (i32, i32) {
    %c0_i32 = arith.constant 0 : i32
    %c0_i32_0 = arith.constant 0 : i32
    %c0_i32_1 = arith.constant 0 : i32
    return %c0_i32, %c0_i32_0 : i32, i32
  }
  func.func @transform_2(%arg0: i32) -> (i32, i32) {
    %c0_i32 = arith.constant 0 : i32
    %c0_i32_0 = arith.constant 0 : i32
    return %c0_i32, %arg0 : i32, i32
  }
}

</mosaic_0001>

<bundles_post_ra>
// kernel: tpu_custom_call.1
= control target key start
LH: loop header
LB: loop body
LE: loop exit
PB: predicated region body
PF: predicated region fallthrough
CT: control target
= control target key end

     0   :  { %vm33_vm0 = vcmask 64512   ;;  %v376_v4 = vmov 0   ;;  %s444_s0 = inlined_call_operand.vmem [shape: f32[8,128], index: 0, kind: input, shape index: {}]   ;;  %s445_s1 = inlined_call_operand.vmem [shape: f32[80,16], index: 1, kind: input, shape index: {}]   ;;  %s446_s2 = inlined_call_operand.hbm [shape: f32[8,128], index: 2, kind: output, shape index: {}]  }
   0x1   :  { %v12_v0 = vld [vmem:[%s444_s0] sm:$0xff]  ;;  %v14_v2 = vld [vmem:[%s445_s1 + $0x8] sm:$0xff]  ;;  %v15_v3 = vld [vmem:[%s445_s1 + $0x10] sm:$0xff]  ;;  %350 = vset.pattern.permute.xlu0 %v376_v4 }
   0x2   :  { %v13_v1 = vld [vmem:[%s445_s1] sm:$0xff]  ;;  %319 = vmatprep.subr.mxu0 %v12_v0 }
   0x3   :  { %321 = vmatprep.mubr.msk.f32.mxu0 %vm33_vm0, %v13_v1  ;;  %320 = vmatpush3.msra.mxu0 %v12_v0 }
   0x4   :  { %7 = vsyncpa [#allocation3], 0  ;;  %322 = vmatmul.mubr.msk.f32.vlgmr.msra.gmra.mrb[0].mxu0 %vm33_vm0, %v14_v2  ;;  %25 = vperm.xlu0 %350, %v15_v3   ;;  %v16_v5 = vld [vmem:[%s445_s1 + $0x18] sm:$0xff]  ;;  %v22_v6 = vld [vmem:[%s445_s1 + $0x48] sm:$0xff]  ;;  %vm127_vm1 = vcmask 130048   ;;  %v377_v20 = vmov 0.0|0.0  }
   0x5   :  { %351 = vset.pattern.permute.xlu1 %v376_v4  ;;  %v17_v7 = vld [vmem:[%s445_s1 + $0x20] sm:$0xff]  ;;  %v19_v8 = vld [vmem:[%s445_s1 + $0x30] sm:$0xff]  ;;  %v20_v9 = vld [vmem:[%s445_s1 + $0x38] sm:$0xff]  ;;  %342 = vmatprep.subr.bf16.mxu0 %v377_v20  ;;  %vm378_vm2 = vmmov 0   ;;  %v379_v21 = vmov 0.0   ;;  %s380_s30 = smov [#allocation2]  }
   0x6   :  { %328 = vmatprep.mubr.msk.f32.mxu1 %vm127_vm1, %v17_v7  ;;  %119 = vperm.xlu1 %351, %v19_v8   ;;  %v18_v19 = vld [vmem:[%s445_s1 + $0x28] sm:$0xff]  ;;  %v21_v31 = vld [vmem:[%s445_s1 + $0x40] sm:$0xff]  ;;  %s296_s3 = sshll.u32 %s380_s30, 4  ;;  %s297_s3 = int_to_ptr.vmem [resolvable:$true] %s296_s3 }
   0x7   :  { %335 = vmatprep.mubr.msk.f32.mxu0 %vm378_vm2, %v379_v21  ;;  %s352_s4 = scalar_lea.vmem %s297_s3, 128  ;;  %p357_p1 = scmp.lt.s32.totalorder %s297_s3, %s297_s3 }
   0x8   :  { %30 = vperm.xlu0 %350, %v16_v5   ;;  %p353_p0 = scmp.ne.s32.totalorder %s297_s3, %s352_s4  ;;  %p358_p2 = scmp.lt.s32.totalorder %s352_s4, %s352_s4 }
   0xa   :  { %124 = vperm.xlu1 %351, %v20_v9   ;;  %p359_p3 = por %p358_p2, %p357_p1 }
   0xc   :  { %213 = vperm.xlu0 %350, %v22_v6   ;;  %p360_p4 = pnand %p359_p3, %p353_p0 }
  0x83   :  { %v26_v10 = vpop.permute.xlu0 %25 }
  0x85   :  { %v120_v22 = vpop.permute.xlu1 %119 }
  0x87   :  { %v31_v11 = vpop.permute.xlu0 %30 }
  0x89   :  { %v125_v23 = vpop.permute.xlu1 %124 }
  0x8b   :  { %v214_v32 = vpop.permute.xlu0 %213 }
  0xd7   :  { %v323_v12 = vpop.f32.mrb[0].mxu0 }
  0xd8   :  { %v112_v13 = vadd.f32 %v323_v12, %v31_v11  ;;  %v106_v14 = vpop.f32.mrb[1].mxu0 }
  0xd9   :  { %v107_v15 = vadd.f32 %v106_v14, %v26_v10 }
  0xda   :  { %v116_v16 = vmax.f32 %v112_v13, 0.0 }
  0xdb   :  { %v115_v17 = vmax.f32 %v107_v15, 0.0 }
  0xdd   :  { %v338_v18 = vpack.c.bf16 %v116_v16, %v115_v17 }
  0xdf   :  { %339 = vmatprep.subr.bf16.mxu1 %v338_v18 }
  0xe0   :  { %341 = vmatpush3.bf16.msra.mxu1 %v338_v18 }
  0xe3   :  { %329 = vmatmul.mubr.msk.f32.vlgmr.msra.gmra.mrb[0].mxu1 %vm127_vm1, %v18_v19 }
 0x1b6   :  { %v330_v24 = vpop.f32.mrb[0].mxu1 }
 0x1b7   :  { %v206_v25 = vadd.f32 %v330_v24, %v125_v23  ;;  %v200_v26 = vpop.f32.mrb[1].mxu1 }
 0x1b8   :  { %v201_v27 = vadd.f32 %v200_v26, %v120_v22 }
 0x1b9   :  { %v210_v28 = vmax.f32 %v206_v25, 0.0 }
 0x1ba   :  { %v209_v29 = vmax.f32 %v201_v27, 0.0 }
 0x1bc   :  { %v343_v30 = vpack.c.bf16 %v210_v28, %v209_v29 }
 0x1be   :  { %344 = vmatpush3.bf16.msra.mxu0 %v343_v30 }
 0x1c1   :  { %336 = vmatmul.mubr.msk.f32.vlgmr.msra.gmra.mrb[2].mxu0 %vm127_vm1, %v21_v31 }
 0x294   :  { %v285_v33 = vpop.f32.mrb[2].mxu0 }
 0x295   :  { %v286_v34 = vadd.f32 %v285_v33, %v214_v32  ;;  %v337_v35 = vpop.f32.mrb[3].mxu0 }
 0x297   :  { %289 = vst [vmem:[#allocation2] sm:$0xff] %v286_v34 }
 0x298   :  { %363 = shalt.err (!%p360_p4)
}
 0x299   :  { %s364_s1 = scalar_lea.hbm %s446_s2, 128 }
 0x29a   :  { %p365_p5 = scmp.ne.s32.totalorder %s446_s2, %s364_s1  ;;  %p368_p6 = scmp.lt.u32.totalorder %s364_s1, %s446_s2 }
 0x29c   :  { %p370_p7 = pnand %p368_p6, %p365_p5 }
 0x29e   :  { %373 = shalt.err (!%p370_p7)
}
 0x29f   :  { %299 = dma.vmem_to_hbm [thread:$0]  %s297_s3, 128, %s446_s2, [#allocation3]  }
 0x2a0   :  { %374 = dma.done.wait [#allocation3], 128  }
 0x2a1   :  { %375 = vsyncadd [#allocation3], 4294967168 }
 0x2a2   :  { %303 = vsyncpa [#allocation3], 1 }

</bundles_post_ra>
